<compile_context>
chip_gen: v7x
topology: tpu7x:2x2x1
jax: 0.10.0
libtpu: 0.0.40
codegen_flags: <defaults>
</compile_context>

<pallas_src>
import functools

import jax
import jax.numpy as jnp
from jax.experimental import pallas as pl
from jax.experimental.pallas import tpu as pltpu

_LN_EPS = 1e-5  # PyTorch nn.LayerNorm default


def _gelu_exact_f32(x):
    # PyTorch nn.GELU() default = exact erf-based GELU; math kept in f32.
    return 0.5 * x * (1.0 + jax.lax.erf(x * 0.7071067811865476))


def _round_up(a, b):
    return (a + b - 1) // b * b


def _pad_to(a, axis, new_size):
    pad = new_size - a.shape[axis]
    if pad == 0:
        return a
    widths = [(0, 0)] * a.ndim
    widths[axis] = (0, pad)
    return jnp.pad(a, widths)


def _vmem_capacity_bytes():
    # Per-TensorCore VMEM: 128 MiB on v5e/v6e, 64 MiB on v7x.  Fall back to the
    # smallest (v7x) so the same wrapper is safe on every generation.
    try:
        return int(pltpu.get_tpu_info().vmem_capacity_bytes)
    except Exception:
        return 64 << 20


# --------------------------------------------------------------------------- #
# Kernels
# --------------------------------------------------------------------------- #
def _prenorm_ffn_resident_kernel(inv_dim, x_ref, g_ref, be_ref, w1_ref, b1_ref,
                                 w2_ref, b2_ref, o_ref):
    # Weights are VMEM-resident (constant index maps): DMA'd from HBM exactly once
    # and reused by every row tile.  No accumulator scratch; output written directly.
    x = x_ref[...].astype(jnp.float32)
    # Two-moment LayerNorm: zero-padded feature columns contribute nothing to the
    # sums, so the stats are exact for the original (unpadded) dim.
    mean = jnp.sum(x, axis=-1, keepdims=True) * inv_dim
    ex2 = jnp.sum(x * x, axis=-1, keepdims=True) * inv_dim
    var = jnp.maximum(ex2 - mean * mean, 0.0)
    inv = jax.lax.rsqrt(var + _LN_EPS)
    xn = (x - mean) * inv * g_ref[...].astype(jnp.float32) + be_ref[...].astype(jnp.float32)
    h = jnp.dot(xn.astype(w1_ref.dtype), w1_ref[...], preferred_element_type=jnp.float32)
    h = _gelu_exact_f32(h + b1_ref[...].astype(jnp.float32))
    o = jnp.dot(h.astype(w2_ref.dtype), w2_ref[...], preferred_element_type=jnp.float32)
    o_ref[...] = (o + b2_ref[...].astype(jnp.float32)).astype(o_ref.dtype)


def _prenorm_ffn_streamed_kernel(inv_dim, x_ref, g_ref, be_ref, w1_ref, b1_ref,
                                 w2_ref, b2_ref, o_ref, xn_ref, acc_ref):
    # Fallback when W1/W2 cannot be kept VMEM-resident: hidden dim tiled on the
    # inner ("arbitrary") grid axis, weight chunks streamed from HBM.
    k = pl.program_id(1)

    @pl.when(k == 0)
    def _init():
        x = x_ref[...].astype(jnp.float32)
        mean = jnp.sum(x, axis=-1, keepdims=True) * inv_dim
        ex2 = jnp.sum(x * x, axis=-1, keepdims=True) * inv_dim
        var = jnp.maximum(ex2 - mean * mean, 0.0)
        inv = jax.lax.rsqrt(var + _LN_EPS)
        xn = (x - mean) * inv * g_ref[...].astype(jnp.float32) + be_ref[...].astype(jnp.float32)
        # Normalized x stored once, already in the weight dtype (no per-k cast).
        xn_ref[...] = xn.astype(xn_ref.dtype)
        # Fold the final bias into the accumulator so the finalize step is a pure
        # cast/store (saves one full (tm, dim) VPU + store sweep per row tile).
        acc_ref[...] = jnp.zeros_like(acc_ref) + b2_ref[...].astype(jnp.float32)

    h = jnp.dot(xn_ref[...], w1_ref[...], preferred_element_type=jnp.float32)
    h = _gelu_exact_f32(h + b1_ref[...].astype(jnp.float32))
    acc_ref[...] += jnp.dot(h.astype(w2_ref.dtype), w2_ref[...],
                            preferred_element_type=jnp.float32)

    @pl.when(k == pl.num_programs(1) - 1)
    def _finalize():
        o_ref[...] = acc_ref[...].astype(o_ref.dtype)


# --------------------------------------------------------------------------- #
# Wrapper
# --------------------------------------------------------------------------- #
@functools.partial(jax.jit, static_argnames=("tm_target", "tk_target", "max_vmem_bytes"))
def prenorm_feed_forward(x, gamma, beta, w1, b1, w2, b2, *,
                         tm_target=None, tk_target=1024, max_vmem_bytes=None):
    """PreNorm(dim, FeedForward): y = GELU(LayerNorm(x) @ W1 + b1) @ W2 + b2.

    x: (batch, seq, dim).  gamma/beta: (dim,).  w1: (dim, hidden) (pre-transposed),
    b1: (hidden,), w2: (hidden, dim) (pre-transposed), b2: (dim,).
    `max_vmem_bytes` only constrains the tiling decision (testing hook).
    """
    batch, seq, dim = x.shape
    hidden = w1.shape[1]
    M = batch * seq

    x_isz = jnp.dtype(x.dtype).itemsize
    w_isz = jnp.dtype(w1.dtype).itemsize

    # Lane-dense layouts: pad dim to 128, hidden to 256 (zero padding is exact:
    # padded gamma/beta/bias columns are zero so padded features stay zero).
    dim_p = _round_up(dim, 128)
    hidden_p = _round_up(hidden, 256)

    vmem_cap = _vmem_capacity_bytes()
    budget = int(vmem_cap * 0.85)
    if max_vmem_bytes is not None:
        budget = min(budget, int(max_vmem_bytes))

    def _row_tile(target):
        return _round_up(min(target, _round_up(M, 8)), 8)

    small_bytes = 2 * (hidden_p + 3 * dim_p) * 4  # gamma/beta/b1/b2 (double-buffered)

    # ---- path selection ---------------------------------------------------- #
    tm_res = _row_tile(256 if tm_target is None else tm_target)
    weight_bytes = 2 * (2 * dim_p * hidden_p) * w_isz          # W1+W2, buffer-conservative
    res_bytes = (4 * tm_res * dim_p * x_isz                    # x + out tiles (x2 buffers)
                 + weight_bytes + small_bytes
                 + tm_res * hidden_p * 4 + tm_res * dim_p * 4)  # h / xn temporaries
    use_resident = res_bytes <= budget

    tk = hidden_p
    nk = 1
    nbuf_w = 2
    if use_resident:
        tm = tm_res
        est_bytes = res_bytes
    else:
        cands = [c for c in (1024, 512, 256, 128)
                 if c <= min(tk_target, hidden_p) and hidden_p % c == 0]
        tk = cands[0] if cands else hidden_p
        nk = hidden_p // tk
        nbuf_w = 3 if nk >= 3 else 2            # deeper weight-chunk buffering (v5e)

        tm = _row_tile(512 if tm_target is None else tm_target)

        def _stream_bytes(t):
            return (4 * t * dim_p * x_isz                       # x + out tiles
                    + nbuf_w * 2 * dim_p * tk * w_isz           # W1/W2 chunks
                    + small_bytes
                    + t * dim_p * w_isz                         # xn scratch (weight dtype)
                    + t * dim_p * 4                             # f32 accumulator
                    + t * tk * 4)                               # h temporary

        while _stream_bytes(tm) > budget and tm > 8:
            tm = max(8, _round_up(tm // 2, 8))
        est_bytes = _stream_bytes(tm)

    M_pad = _round_up(M, tm)
    n_row_tiles = M_pad // tm

    # ---- pad operands ------------------------------------------------------ #
    # NOTE: padded rows are all-zero; LayerNorm on them is finite (var=0 -> rsqrt(eps))
    # and they are sliced off below -- do not remove the [:M, :dim] slice.
    x2d = _pad_to(_pad_to(x.reshape(M, dim), 1, dim_p), 0, M_pad)
    g2d = _pad_to(gamma.reshape(1, dim), 1, dim_p)
    be2d = _pad_to(beta.reshape(1, dim), 1, dim_p)
    w1p = _pad_to(_pad_to(w1, 0, dim_p), 1, hidden_p)
    b1p = _pad_to(b1.reshape(1, hidden), 1, hidden_p)
    w2p = _pad_to(_pad_to(w2, 0, hidden_p), 1, dim_p)
    b2p = _pad_to(b2.reshape(1, dim), 1, dim_p)

    inv_dim = 1.0 / float(dim)

    # VMEM request derived from the real tile footprint, capped by chip capacity
    # (64 MiB on v7x, 128 MiB on v5e/v6e).
    vmem_limit = int(min(max(est_bytes * 1.5 + (4 << 20), 16 << 20), vmem_cap * 0.9))

    weight_passes = 1 if use_resident else n_row_tiles
    cost = pl.CostEstimate(
        flops=int(4 * M_pad * dim_p * hidden_p),
        transcendentals=int(M_pad * hidden_p),
        bytes_accessed=int(2 * M_pad * dim_p * x_isz
                           + weight_passes * 2 * dim_p * hidden_p * w_isz
                           + weight_passes * (hidden_p + 3 * dim_p) * 4),
    )

    if use_resident:
        grid_spec = pltpu.PrefetchScalarGridSpec(
            num_scalar_prefetch=0,
            grid=(n_row_tiles,),
            in_specs=[
                pl.BlockSpec((tm, dim_p), lambda i: (i, 0)),        # x row tile
                pl.BlockSpec((1, dim_p), lambda i: (0, 0)),         # gamma
                pl.BlockSpec((1, dim_p), lambda i: (0, 0)),         # beta
                pl.BlockSpec((dim_p, hidden_p), lambda i: (0, 0)),  # W1 (resident)
                pl.BlockSpec((1, hidden_p), lambda i: (0, 0)),      # b1
                pl.BlockSpec((hidden_p, dim_p), lambda i: (0, 0)),  # W2 (resident)
                pl.BlockSpec((1, dim_p), lambda i: (0, 0)),         # b2
            ],
            out_specs=pl.BlockSpec((tm, dim_p), lambda i: (i, 0)),
            scratch_shapes=[],
        )
        kernel = functools.partial(_prenorm_ffn_resident_kernel, inv_dim)
        dim_sem = ("parallel",)
    else:
        w_kwargs = {"pipeline_mode": pl.Buffered(3)} if nbuf_w == 3 else {}
        grid_spec = pltpu.PrefetchScalarGridSpec(
            num_scalar_prefetch=0,
            grid=(n_row_tiles, nk),
            in_specs=[
                pl.BlockSpec((tm, dim_p), lambda i, k: (i, 0)),              # x row tile
                pl.BlockSpec((1, dim_p), lambda i, k: (0, 0)),               # gamma
                pl.BlockSpec((1, dim_p), lambda i, k: (0, 0)),               # beta
                pl.BlockSpec((dim_p, tk), lambda i, k: (0, k), **w_kwargs),  # W1 chunk
                pl.BlockSpec((1, tk), lambda i, k: (0, k)),                  # b1 chunk
                pl.BlockSpec((tk, dim_p), lambda i, k: (k, 0), **w_kwargs),  # W2 chunk
                pl.BlockSpec((1, dim_p), lambda i, k: (0, 0)),               # b2
            ],
            out_specs=pl.BlockSpec((tm, dim_p), lambda i, k: (i, 0)),
            scratch_shapes=[
                pltpu.VMEM((tm, dim_p), w1.dtype),     # normalized x (weight dtype)
                pltpu.VMEM((tm, dim_p), jnp.float32),  # accumulator (b2 folded in)
            ],
        )
        kernel = functools.partial(_prenorm_ffn_streamed_kernel, inv_dim)
        dim_sem = ("parallel", "arbitrary")

    out2d = pl.pallas_call(
        kernel,
        out_shape=jax.ShapeDtypeStruct((M_pad, dim_p), x.dtype),
        grid_spec=grid_spec,
        compiler_params=pltpu.CompilerParams(
            dimension_semantics=dim_sem,
            vmem_limit_bytes=vmem_limit,
        ),
        cost_estimate=cost,
    )(x2d, g2d, be2d, w1p, b1p, w2p, b2p)

    return out2d[:M, :dim].reshape(batch, seq, dim)


# --------------------------------------------------------------------------- #
# Reference & demo
# --------------------------------------------------------------------------- #
def _reference(x, gamma, beta, w1, b1, w2, b2):
    mean = jnp.mean(x, axis=-1, keepdims=True)
    var = jnp.mean((x - mean) ** 2, axis=-1, keepdims=True)
    xn = (x - mean) * jax.lax.rsqrt(var + _LN_EPS) * gamma + beta
    h = jnp.dot(xn, w1) + b1
    h = 0.5 * h * (1.0 + jax.lax.erf(h / jnp.sqrt(2.0)))
    return jnp.dot(h, w2) + b2


if __name__ == "__main__":
    # Small shapes consistent with the module: token stream (batch, seq, dim).
    batch, seq, dim, hidden = 2, 8, 128, 256

    key = jax.random.PRNGKey(0)
    kx, kg, kbt, kw1, kb1, kw2, kb2 = jax.random.split(key, 7)

    x = jax.random.normal(kx, (batch, seq, dim), dtype=jnp.float32)
    gamma = 1.0 + 0.05 * jax.random.normal(kg, (dim,), dtype=jnp.float32)
    beta = 0.05 * jax.random.normal(kbt, (dim,), dtype=jnp.float32)
    # PyTorch Linear weights would be W1 (hidden, dim), W2 (dim, hidden);
    # stored here pre-transposed as (in, out).
    w1 = jax.random.normal(kw1, (dim, hidden), dtype=jnp.float32) * 0.05
    b1 = jax.random.normal(kb1, (hidden,), dtype=jnp.float32) * 0.05
    w2 = jax.random.normal(kw2, (hidden, dim), dtype=jnp.float32) * 0.05
    b2 = jax.random.normal(kb2, (dim,), dtype=jnp.float32) * 0.05

    ref = _reference(x, gamma, beta, w1, b1, w2, b2)

    # Default path: weights VMEM-resident, single grid axis, no accumulator.
    out = jax.block_until_ready(prenorm_feed_forward(x, gamma, beta, w1, b1, w2, b2))
    assert out.shape == (batch, seq, dim)
    assert jnp.allclose(out, ref, atol=1e-4, rtol=1e-4), "resident-path mismatch vs reference"

    # Also exercise the k-tiled streamed-weight fallback (used for very large hidden):
    # a tiny tiling budget forces the streamed path with 2 hidden chunks.
    out_s = jax.block_until_ready(
        prenorm_feed_forward(x, gamma, beta, w1, b1, w2, b2,
                             tk_target=128, max_vmem_bytes=512 << 10))
    assert jnp.allclose(out_s, ref, atol=1e-4, rtol=1e-4), "streamed-path mismatch vs reference"

    print("KERNEL_OK")
</pallas_src>

<mosaic_0001>
module attributes {stable_mosaic.version = 11 : i64} {
  func.func @_prenorm_ffn_resident_kernel(%arg0: i32, %arg1: memref<16x128xf32, #tpu.memory_space<vmem>>, %arg2: memref<1x128xf32, #tpu.memory_space<vmem>>, %arg3: memref<1x128xf32, #tpu.memory_space<vmem>>, %arg4: memref<128x256xf32, #tpu.memory_space<vmem>>, %arg5: memref<1x256xf32, #tpu.memory_space<vmem>>, %arg6: memref<256x128xf32, #tpu.memory_space<vmem>>, %arg7: memref<1x128xf32, #tpu.memory_space<vmem>>, %arg8: memref<16x128xf32, #tpu.memory_space<vmem>>) attributes {dimension_semantics = [#tpu.dimension_semantics<parallel>], iteration_bounds = array<i64: 1>, scalar_prefetch = 0 : i64, scratch_operands = 0 : i64, tpu.core_type = #tpu.core_type<tc>, window_params = [{transform_indices = @transform_0, window_bounds = array<i64: 16, 128>}, {pipeline_mode = #tpu.pipeline_mode<synchronous>, transform_indices = @transform_1, window_bounds = array<i64: 1, 128>}, {pipeline_mode = #tpu.pipeline_mode<synchronous>, transform_indices = @transform_2, window_bounds = array<i64: 1, 128>}, {pipeline_mode = #tpu.pipeline_mode<synchronous>, transform_indices = @transform_3, window_bounds = array<i64: 128, 256>}, {pipeline_mode = #tpu.pipeline_mode<synchronous>, transform_indices = @transform_4, window_bounds = array<i64: 1, 256>}, {pipeline_mode = #tpu.pipeline_mode<synchronous>, transform_indices = @transform_5, window_bounds = array<i64: 256, 128>}, {pipeline_mode = #tpu.pipeline_mode<synchronous>, transform_indices = @transform_6, window_bounds = array<i64: 1, 128>}, {transform_indices = @transform_7, window_bounds = array<i64: 16, 128>}]} {
    %c0 = arith.constant 0 : index
    %c0_0 = arith.constant 0 : index
    %0 = vector.load %arg1[%c0, %c0_0] : memref<16x128xf32, #tpu.memory_space<vmem>>, vector<16x128xf32>
    %cst = arith.constant dense<0.000000e+00> : vector<16xf32>
    %1 = vector.multi_reduction <add>, %0, %cst [1] : vector<16x128xf32> to vector<16xf32>
    %2 = vector.shape_cast %1 : vector<16xf32> to vector<16x1xf32>
    %cst_1 = arith.constant 7.812500e-03 : f32
    %3 = vector.broadcast %cst_1 : f32 to vector<16x1xf32>
    %4 = arith.mulf %2, %3 : vector<16x1xf32>
    %5 = arith.mulf %0, %0 : vector<16x128xf32>
    %cst_2 = arith.constant dense<0.000000e+00> : vector<16xf32>
    %6 = vector.multi_reduction <add>, %5, %cst_2 [1] : vector<16x128xf32> to vector<16xf32>
    %7 = vector.shape_cast %6 : vector<16xf32> to vector<16x1xf32>
    %cst_3 = arith.constant 7.812500e-03 : f32
    %8 = vector.broadcast %cst_3 : f32 to vector<16x1xf32>
    %9 = arith.mulf %7, %8 : vector<16x1xf32>
    %10 = arith.mulf %4, %4 : vector<16x1xf32>
    %11 = arith.subf %9, %10 : vector<16x1xf32>
    %cst_4 = arith.constant 0.000000e+00 : f32
    %12 = vector.broadcast %cst_4 : f32 to vector<16x1xf32>
    %13 = arith.maximumf %11, %12 : vector<16x1xf32>
    %cst_5 = arith.constant 9.99999974E-6 : f32
    %14 = vector.broadcast %cst_5 : f32 to vector<16x1xf32>
    %15 = arith.addf %13, %14 : vector<16x1xf32>
    %16 = math.rsqrt %15 : vector<16x1xf32>
    %17 = vector.broadcast %4 : vector<16x1xf32> to vector<16x128xf32>
    %18 = arith.subf %0, %17 : vector<16x128xf32>
    %19 = vector.broadcast %16 : vector<16x1xf32> to vector<16x128xf32>
    %20 = arith.mulf %18, %19 : vector<16x128xf32>
    %c0_6 = arith.constant 0 : index
    %c0_7 = arith.constant 0 : index
    %21 = vector.load %arg2[%c0_6, %c0_7] : memref<1x128xf32, #tpu.memory_space<vmem>>, vector<1x128xf32>
    %22 = vector.broadcast %21 : vector<1x128xf32> to vector<16x128xf32>
    %23 = arith.mulf %20, %22 : vector<16x128xf32>
    %c0_8 = arith.constant 0 : index
    %c0_9 = arith.constant 0 : index
    %24 = vector.load %arg3[%c0_8, %c0_9] : memref<1x128xf32, #tpu.memory_space<vmem>>, vector<1x128xf32>
    %25 = vector.broadcast %24 : vector<1x128xf32> to vector<16x128xf32>
    %26 = arith.addf %23, %25 : vector<16x128xf32>
    %c0_10 = arith.constant 0 : index
    %c0_11 = arith.constant 0 : index
    %27 = vector.load %arg4[%c0_10, %c0_11] : memref<128x256xf32, #tpu.memory_space<vmem>>, vector<128x256xf32>
    %cst_12 = arith.constant dense<0.000000e+00> : vector<16x256xf32>
    %28 = tpu.matmul %26, %27, %cst_12 {dimension_numbers = #tpu.dot_dimension_numbers<[1], [0], [0], [1], [0, 0, 1, 1], [], []>} : vector<16x128xf32>, vector<128x256xf32>, vector<16x256xf32> -> vector<16x256xf32>
    %c0_13 = arith.constant 0 : index
    %c0_14 = arith.constant 0 : index
    %29 = vector.load %arg5[%c0_13, %c0_14] : memref<1x256xf32, #tpu.memory_space<vmem>>, vector<1x256xf32>
    %30 = vector.broadcast %29 : vector<1x256xf32> to vector<16x256xf32>
    %31 = arith.addf %28, %30 : vector<16x256xf32>
    %cst_15 = arith.constant 5.000000e-01 : f32
    %32 = vector.broadcast %cst_15 : f32 to vector<16x256xf32>
    %33 = arith.mulf %32, %31 : vector<16x256xf32>
    %cst_16 = arith.constant 0.707106769 : f32
    %34 = vector.broadcast %cst_16 : f32 to vector<16x256xf32>
    %35 = arith.mulf %31, %34 : vector<16x256xf32>
    %36 = math.erf %35 : vector<16x256xf32>
    %cst_17 = arith.constant 1.000000e+00 : f32
    %37 = vector.broadcast %cst_17 : f32 to vector<16x256xf32>
    %38 = arith.addf %37, %36 : vector<16x256xf32>
    %39 = arith.mulf %33, %38 : vector<16x256xf32>
    %c0_18 = arith.constant 0 : index
    %c0_19 = arith.constant 0 : index
    %40 = vector.load %arg6[%c0_18, %c0_19] : memref<256x128xf32, #tpu.memory_space<vmem>>, vector<256x128xf32>
    %cst_20 = arith.constant dense<0.000000e+00> : vector<16x128xf32>
    %41 = tpu.matmul %39, %40, %cst_20 {dimension_numbers = #tpu.dot_dimension_numbers<[1], [0], [0], [1], [0, 0, 1, 1], [], []>} : vector<16x256xf32>, vector<256x128xf32>, vector<16x128xf32> -> vector<16x128xf32>
    %c0_21 = arith.constant 0 : index
    %c0_22 = arith.constant 0 : index
    %42 = vector.load %arg7[%c0_21, %c0_22] : memref<1x128xf32, #tpu.memory_space<vmem>>, vector<1x128xf32>
    %43 = vector.broadcast %42 : vector<1x128xf32> to vector<16x128xf32>
    %44 = arith.addf %41, %43 : vector<16x128xf32>
    %c0_23 = arith.constant 0 : index
    %c0_24 = arith.constant 0 : index
    %45 = vector.load %arg8[%c0_23, %c0_24] : memref<16x128xf32, #tpu.memory_space<vmem>>, vector<16x128xf32>
    tpu.vector_store %arg8[%c0_23, %c0_24], %44 {strides = array<i32>} : memref<16x128xf32, #tpu.memory_space<vmem>>, vector<16x128xf32>,
    return
  }
  func.func @transform_0(%arg0: i32) -> (i32, i32) {
    %c0_i32 = arith.constant 0 : i32
    %c0_i32_0 = arith.constant 0 : i32
    return %arg0, %c0_i32 : i32, i32
  }
  func.func @transform_1(%arg0: i32) -> (i32, i32) {
    %c0_i32 = arith.constant 0 : i32
    %c0_i32_0 = arith.constant 0 : i32
    %c0_i32_1 = arith.constant 0 : i32
    return %c0_i32, %c0_i32_0 : i32, i32
  }
  func.func @transform_2(%arg0: i32) -> (i32, i32) {
    %c0_i32 = arith.constant 0 : i32
    %c0_i32_0 = arith.constant 0 : i32
    %c0_i32_1 = arith.constant 0 : i32
    return %c0_i32, %c0_i32_0 : i32, i32
  }
  func.func @transform_3(%arg0: i32) -> (i32, i32) {
    %c0_i32 = arith.constant 0 : i32
    %c0_i32_0 = arith.constant 0 : i32
    %c0_i32_1 = arith.constant 0 : i32
    return %c0_i32, %c0_i32_0 : i32, i32
  }
  func.func @transform_4(%arg0: i32) -> (i32, i32) {
    %c0_i32 = arith.constant 0 : i32
    %c0_i32_0 = arith.constant 0 : i32
    %c0_i32_1 = arith.constant 0 : i32
    return %c0_i32, %c0_i32_0 : i32, i32
  }
  func.func @transform_5(%arg0: i32) -> (i32, i32) {
    %c0_i32 = arith.constant 0 : i32
    %c0_i32_0 = arith.constant 0 : i32
    %c0_i32_1 = arith.constant 0 : i32
    return %c0_i32, %c0_i32_0 : i32, i32
  }
  func.func @transform_6(%arg0: i32) -> (i32, i32) {
    %c0_i32 = arith.constant 0 : i32
    %c0_i32_0 = arith.constant 0 : i32
    %c0_i32_1 = arith.constant 0 : i32
    return %c0_i32, %c0_i32_0 : i32, i32
  }
  func.func @transform_7(%arg0: i32) -> (i32, i32) {
    %c0_i32 = arith.constant 0 : i32
    %c0_i32_0 = arith.constant 0 : i32
    return %arg0, %c0_i32 : i32, i32
  }
}

</mosaic_0001>

<bundles_post_ra>
// kernel: prenorm_feed_forward.1
= control target key start
LH: loop header
LB: loop body
LE: loop exit
PB: predicated region body
PF: predicated region fallthrough
CT: control target
= control target key end

     0   :  { %12 = vsyncpa [#allocation3], 0  ;;  %s697_s0 = inlined_call_operand.vmem [shape: f32[16,128], index: 0, kind: input, shape index: {}]   ;;  %s698_s1 = inlined_call_operand.vmem [shape: f32[1,128], index: 1, kind: input, shape index: {}]   ;;  %s699_s2 = inlined_call_operand.vmem [shape: f32[1,128], index: 2, kind: input, shape index: {}]   ;;  %s700_s3 = inlined_call_operand.hbm [shape: f32[128,256], index: 3, kind: input, shape index: {}]   ;;  %s701_s4 = inlined_call_operand.vmem [shape: f32[1,256], index: 4, kind: input, shape index: {}]   ;;  %s702_s5 = inlined_call_operand.hbm [shape: f32[256,128], index: 5, kind: input, shape index: {}]   ;;  %s703_s6 = inlined_call_operand.vmem [shape: f32[1,128], index: 6, kind: input, shape index: {}]   ;;  %s704_s7 = inlined_call_operand.hbm [shape: f32[16,128], index: 7, kind: output, shape index: {}]  }
   0x1   :  { %13 = vsyncpa [#allocation6], 0 }
   0x2   :  { %14 = vsyncpa [#allocation4], 0  ;;  %s575_s24 = smov [#allocation2]   ;;  %s503_s28 = scalar_lea.hbm %s700_s3, 4096 }
   0x3   :  { %s26_s25 = sshll.u32 %s575_s24, 4  ;;  %p504_p0 = scmp.ne.s32.totalorder %s700_s3, %s503_s28  ;;  %s27_s25 = int_to_ptr.vmem [resolvable:$true] %s26_s25 }
   0x4   :  { %p507_p1 = scmp.lt.u32.totalorder %s503_s28, %s700_s3 }
   0x6   :  { %p509_p2 = pnand %p507_p1, %p504_p0 }
   0x8   :  { %512 = shalt.err (!%p509_p2)
}
   0x9   :  { %s513_s10 = scalar_lea.vmem %s27_s25, 4096  ;;  %p518_p4 = scmp.lt.s32.totalorder %s27_s25, %s27_s25 }
   0xa   :  { %p514_p3 = scmp.ne.s32.totalorder %s27_s25, %s513_s10  ;;  %p519_p5 = scmp.lt.s32.totalorder %s513_s10, %s513_s10 }
   0xc   :  { %p520_p6 = por %p519_p5, %p518_p4 }
   0xe   :  { %p521_p7 = pnand %p520_p6, %p514_p3 }
  0x10   :  { %524 = shalt.err (!%p521_p7)
}
  0x11   :  { %s576_s11 = smov 256   ;;  %s577_s12 = smov 16  }
  0x12   :  { %32 = dma.hbm_to_vmem [thread:$0]  %s700_s3, 4096, %s27_s25, [#allocation3], %s576_s11, %s576_s11, %s577_s12  }
  0x13   :  { %s578_s15 = smov [#allocation5]   ;;  %s525_s19 = scalar_lea.hbm %s702_s5, 4096 }
  0x14   :  { %s40_s16 = sshll.u32 %s578_s15, 4  ;;  %p526_p8 = scmp.ne.s32.totalorder %s702_s5, %s525_s19  ;;  %s41_s16 = int_to_ptr.vmem [resolvable:$true] %s40_s16 }
  0x15   :  { %p529_p9 = scmp.lt.u32.totalorder %s525_s19, %s702_s5 }
  0x17   :  { %p531_p10 = pnand %p529_p9, %p526_p8 }
  0x19   :  { %534 = shalt.err (!%p531_p10)
}
  0x1a   :  { %s535_s24 = scalar_lea.vmem %s41_s16, 4096  ;;  %p540_p12 = scmp.lt.s32.totalorder %s41_s16, %s41_s16 }
  0x1b   :  { %p536_p11 = scmp.ne.s32.totalorder %s41_s16, %s535_s24  ;;  %p541_p13 = scmp.lt.s32.totalorder %s535_s24, %s535_s24 }
  0x1d   :  { %p542_p0 = por %p541_p13, %p540_p12 }
  0x1f   :  { %p543_p1 = pnand %p542_p0, %p536_p11 }
  0x21   :  { %546 = shalt.err (!%p543_p1)
}
  0x22   :  { %s579_s3 = smov 128   ;;  %s580_s25 = smov 8  }
  0x23   :  { %46 = dma.hbm_to_vmem [thread:$0]  %s702_s5, 4096, %s41_s16, [#allocation6], %s579_s3, %s579_s3, %s580_s25  }
  0x24   :  { %569 = dma.done.wait [#allocation3], 4096  }
  0x25   :  { %570 = vsyncadd [#allocation3], 4294963200 }
  0x26   :  { %571 = dma.done.wait [#allocation6], 4096  }
  0x27   :  { %572 = vsyncadd [#allocation6], 4294963200  ;;  %v653_v0 = vld [vmem:[%s697_s0 + $0x8] sm:$0xff]  ;;  %v658_v1 = vld [vmem:[%s697_s0] sm:$0xff]  ;;  %v581_v41 = vmov 0.0   ;;  %s582_s12 = smov [#allocation7]  }
  0x28   :  { %v104_v2 = vld [vmem:[#allocation2 + $0x8] sm:$0xff]  ;;  %59 = vadd.xlane.f32.xlu1 %v653_v0  ;;  %57 = vadd.xlane.f32.xlu0 %v658_v1  ;;  %v64_v3 = vmul.f32 %v653_v0, %v653_v0  ;;  %v63_v4 = vmul.f32 %v658_v1, %v658_v1  ;;  %v106_v5 = vld [vmem:[#allocation2 + $0x18] sm:$0xff]  ;;  %v103_v6 = vld [vmem:[#allocation2] sm:$0xff]  ;;  %s365_s13 = sshll.u32 %s582_s12, 4  ;;  %s366_s13 = int_to_ptr.vmem [resolvable:$true] %s365_s13 }
  0x29   :  { %v105_v7 = vld [vmem:[#allocation2 + $0x10] sm:$0xff]  ;;  %v419_v8 = vpack.c.bf16 %v106_v5, %v104_v2  ;;  %v108_v10 = vld [vmem:[#allocation2 + $0x28] sm:$0xff]  ;;  %v110_v11 = vld [vmem:[#allocation2 + $0x38] sm:$0xff]  ;;  %211 = vmatprep.mubr.f32.mxu0 %v581_v41  ;;  %s547_s14 = scalar_lea.vmem %s366_s13, 256  ;;  %p552_p3 = scmp.lt.s32.totalorder %s366_s13, %s366_s13 }
  0x2a   :  { %v421_v9 = vpack.c.bf16 %v105_v7, %v103_v6  ;;  %v423_v12 = vpack.c.bf16 %v110_v11, %v108_v10  ;;  %v107_v13 = vld [vmem:[#allocation2 + $0x20] sm:$0xff]  ;;  %v109_v14 = vld [vmem:[#allocation2 + $0x30] sm:$0xff]  ;;  %v112_v16 = vld [vmem:[#allocation2 + $0x48] sm:$0xff]  ;;  %p548_p2 = scmp.ne.s32.totalorder %s366_s13, %s547_s14  ;;  %p553_p4 = scmp.lt.s32.totalorder %s547_s14, %s547_s14 }
  0x2b   :  { %420 = vmatprep.subr.bf16.mxu0 %v419_v8  ;;  %v425_v15 = vpack.c.bf16 %v109_v14, %v107_v13  ;;  %v114_v17 = vld [vmem:[#allocation2 + $0x58] sm:$0xff]  ;;  %v111_v19 = vld [vmem:[#allocation2 + $0x40] sm:$0xff]  ;;  %v113_v20 = vld [vmem:[#allocation2 + $0x50] sm:$0xff] }
  0x2c   :  { %67 = vadd.xlane.f32.xlu1 %v64_v3  ;;  %65 = vadd.xlane.f32.xlu0 %v63_v4  ;;  %v427_v18 = vpack.c.bf16 %v114_v17, %v112_v16  ;;  %v429_v21 = vpack.c.bf16 %v113_v20, %v111_v19  ;;  %v116_v22 = vld [vmem:[#allocation2 + $0x68] sm:$0xff]  ;;  %v118_v23 = vld [vmem:[#allocation2 + $0x78] sm:$0xff]  ;;  %v115_v25 = vld [vmem:[#allocation2 + $0x60] sm:$0xff]  ;;  %p554_p5 = por %p553_p4, %p552_p3 }
  0x2d   :  { %422 = vmatpush1.bf16.msra.mxu0 %v421_v9  ;;  %v431_v24 = vpack.c.bf16 %v118_v23, %v116_v22  ;;  %v117_v26 = vld [vmem:[#allocation2 + $0x70] sm:$0xff]  ;;  %v120_v28 = vld [vmem:[#allocation2 + $0x88] sm:$0xff]  ;;  %v122_v29 = vld [vmem:[#allocation2 + $0x98] sm:$0xff] }
  0x2e   :  { %424 = vmatprep.subr.bf16.mxu0 %v423_v12  ;;  %v433_v27 = vpack.c.bf16 %v117_v26, %v115_v25  ;;  %v435_v30 = vpack.c.bf16 %v122_v29, %v120_v28  ;;  %v119_v31 = vld [vmem:[#allocation2 + $0x80] sm:$0xff]  ;;  %v121_v32 = vld [vmem:[#allocation2 + $0x90] sm:$0xff]  ;;  %v124_v34 = vld [vmem:[#allocation2 + $0xa8] sm:$0xff]  ;;  %p555_p6 = pnand %p554_p5, %p548_p2 }
  0x2f   :  { %v437_v33 = vpack.c.bf16 %v121_v32, %v119_v31  ;;  %v126_v35 = vld [vmem:[#allocation2 + $0xb8] sm:$0xff]  ;;  %v123_v36 = vld [vmem:[#allocation2 + $0xa0] sm:$0xff]  ;;  %v125_v38 = vld [vmem:[#allocation2 + $0xb0] sm:$0xff] }
  0x30   :  { %v439_v37 = vpack.c.bf16 %v126_v35, %v124_v34  ;;  %v128_v39 = vld [vmem:[#allocation2 + $0xc8] sm:$0xff]  ;;  %v130_v40 = vld [vmem:[#allocation2 + $0xd8] sm:$0xff]  ;;  %v441_v42 = vpack.c.bf16 %v125_v38, %v123_v36  ;;  %v127_v44 = vld [vmem:[#allocation2 + $0xc0] sm:$0xff] }
  0x31   :  { %426 = vmatpush1.bf16.msra.mxu0 %v425_v15  ;;  %v443_v43 = vpack.c.bf16 %v130_v40, %v128_v39  ;;  %v129_v45 = vld [vmem:[#allocation2 + $0xd0] sm:$0xff]  ;;  %v132_v46 = vld [vmem:[#allocation2 + $0xe8] sm:$0xff]  ;;  %v134_v47 = vld [vmem:[#allocation2 + $0xf8] sm:$0xff] }
  0x32   :  { %428 = vmatprep.subr.bf16.mxu0 %v427_v18  ;;  %v445_v48 = vpack.c.bf16 %v129_v45, %v127_v44  ;;  %v447_v49 = vpack.c.bf16 %v134_v47, %v132_v46  ;;  %v131_v50 = vld [vmem:[#allocation2 + $0xe0] sm:$0xff]  ;;  %v133_v51 = vld [vmem:[#allocation2 + $0xf0] sm:$0xff]  ;;  %v261_v54 = vld [vmem:[#allocation5 + $0x88] sm:$0xff] }
  0x33   :  { %v449_v52 = vpack.c.bf16 %v133_v51, %v131_v50  ;;  %v260_v53 = vld [vmem:[#allocation5 + $0x80] sm:$0xff]  ;;  %v245_v57 = vld [vmem:[#allocation5 + $0x8] sm:$0xff]  ;;  %v262_v58 = vld [vmem:[#allocation5 + $0x90] sm:$0xff] }
  0x34   :  { %v244_v55 = vld [vmem:[#allocation5] sm:$0xff]  ;;  %v451_v56 = vpack.c.bf16 %v261_v54, %v260_v53  ;;  %v263_v59 = vld [vmem:[#allocation5 + $0x98] sm:$0xff]  ;;  %v246_v62 = vld [vmem:[#allocation5 + $0x10] sm:$0xff] }
  0x35   :  { %430 = vmatpush1.bf16.msra.mxu0 %v429_v21  ;;  %v453_v60 = vpack.c.bf16 %v245_v57, %v244_v55  ;;  %v455_v61 = vpack.c.bf16 %v263_v59, %v262_v58  ;;  %v247_v63 = vld [vmem:[#allocation5 + $0x18] sm:$0xff]  ;;  %v264_v2 = vld [vmem:[#allocation5 + $0xa0] sm:$0xff]  ;;  %v265_v3 = vld [vmem:[#allocation5 + $0xa8] sm:$0xff] }
  0x36   :  { %432 = vmatprep.subr.bf16.mxu0 %v431_v24  ;;  %452 = vmatprep.subr.bf16.mxu1 %v451_v56  ;;  %v457_v4 = vpack.c.bf16 %v247_v63, %v246_v62  ;;  %v459_v5 = vpack.c.bf16 %v265_v3, %v264_v2  ;;  %v248_v6 = vld [vmem:[#allocation5 + $0x20] sm:$0xff]  ;;  %v249_v7 = vld [vmem:[#allocation5 + $0x28] sm:$0xff]  ;;  %v267_v36 = vld [vmem:[#allocation5 + $0xb8] sm:$0xff]  ;;  %v137_v3 = vlaneseq }
  0x37   :  { %454 = vmatpush3.bf16.msra.mxu1 %v453_v60  ;;  %v461_v8 = vpack.c.bf16 %v249_v7, %v248_v6  ;;  %v378_v29 = vld [vmem:[%s698_s1] ss:$0 sm:$0xff]  ;;  %v250_v38 = vld [vmem:[#allocation5 + $0x30] sm:$0xff]  ;;  %v251_v39 = vld [vmem:[#allocation5 + $0x38] sm:$0xff] }
  0x38   :  { %456 = vmatprep.subr.bf16.mxu1 %v455_v61  ;;  %v379_v32 = vld [vmem:[%s699_s2] ss:$0 sm:$0xff]  ;;  %v465_v40 = vpack.c.bf16 %v251_v39, %v250_v38  ;;  %v253_v46 = vld [vmem:[#allocation5 + $0x48] sm:$0xff]  ;;  %v254_v50 = vld [vmem:[#allocation5 + $0x50] sm:$0xff] }
  0x39   :  { %434 = vmatpush1.bf16.msra.mxu0 %v433_v27  ;;  %v252_v45 = vld [vmem:[#allocation5 + $0x40] sm:$0xff]  ;;  %v255_v51 = vld [vmem:[#allocation5 + $0x58] sm:$0xff]  ;;  %v273_v54 = vld [vmem:[#allocation5 + $0xe8] sm:$0xff] }
  0x3a   :  { %436 = vmatprep.subr.bf16.mxu0 %v435_v30  ;;  %v469_v47 = vpack.c.bf16 %v253_v46, %v252_v45  ;;  %v272_v53 = vld [vmem:[#allocation5 + $0xe0] sm:$0xff]  ;;  %v257_v57 = vld [vmem:[#allocation5 + $0x68] sm:$0xff]  ;;  %v274_v59 = vld [vmem:[#allocation5 + $0xf0] sm:$0xff] }
  0x3b   :  { %458 = vmatpush3.bf16.msra.mxu1 %v457_v4  ;;  %v475_v55 = vpack.c.bf16 %v273_v54, %v272_v53  ;;  %v256_v56 = vld [vmem:[#allocation5 + $0x60] sm:$0xff]  ;;  %v275_v60 = vld [vmem:[#allocation5 + $0xf8] sm:$0xff]  ;;  %v258_v62 = vld [vmem:[#allocation5 + $0x70] sm:$0xff]  ;;  %v138_v4 = vshrl.u32 %v137_v3, 7 }
  0x3c   :  { %460 = vmatprep.subr.bf16.mxu1 %v459_v5  ;;  %v477_v58 = vpack.c.bf16 %v257_v57, %v256_v56  ;;  %v479_v61 = vpack.c.bf16 %v275_v60, %v274_v59  ;;  %v259_v63 = vld [vmem:[#allocation5 + $0x78] sm:$0xff]  ;;  %v135_v6 = vld [vmem:[%s701_s4] sm:$0x3] }
  0x3d   :  { %438 = vmatpush1.bf16.msra.mxu0 %v437_v33  ;;  %v481_v2 = vpack.c.bf16 %v259_v63, %v258_v62  ;;  %v139_v5 = vsub.s32 0, %v138_v4  ;;  %v143_v7 = vsub.s32 1, %v138_v4 }
  0x3e   :  { %440 = vmatprep.subr.bf16.mxu0 %v439_v37 }
  0x3f   :  { %462 = vmatpush3.bf16.msra.mxu1 %v461_v8  ;;  %v140_v8 = vrot.slane %v135_v6, %v139_v5 }
  0x41   :  { %442 = vmatpush1.bf16.msra.mxu0 %v441_v42  ;;  %v268_v42 = vld [vmem:[#allocation5 + $0xc0] sm:$0xff] }
  0x42   :  { %444 = vmatprep.subr.bf16.mxu0 %v443_v43  ;;  %v269_v43 = vld [vmem:[#allocation5 + $0xc8] sm:$0xff] }
  0x43   :  { %v467_v44 = vpack.c.bf16 %v269_v43, %v268_v42 }
  0x45   :  { %446 = vmatpush1.bf16.msra.mxu0 %v445_v48  ;;  %v270_v48 = vld [vmem:[#allocation5 + $0xd0] sm:$0xff] }
  0x46   :  { %448 = vmatprep.subr.bf16.mxu0 %v447_v49 }
  0x49   :  { %450 = vmatpush1.bf16.msra.mxu0 %v449_v52  ;;  %v473_v52 = vpack.c.bf16 %v255_v51, %v254_v50 }
  0xb5   :  { %v60_v9 = vpop.xlane.xlu1 %59  ;;  %v58_v10 = vpop.xlane.xlu0 %57 }
  0xb6   :  { %v62_v11 = vmul.f32 0.0078125, %v60_v9  ;;  %v61_v12 = vmul.f32 0.0078125, %v58_v10  ;;  %v144_v9 = vrot.slane %v135_v6, %v143_v7 }
  0xb8   :  { %v72_v13 = vmul.f32 %v62_v11, %v62_v11  ;;  %v71_v16 = vmul.f32 %v61_v12, %v61_v12  ;;  %v82_v26 = vsub.f32 %v653_v0, %v62_v11  ;;  %v81_v27 = vsub.f32 %v658_v1, %v61_v12  ;;  %v266_v1 = vld [vmem:[#allocation5 + $0xb0] sm:$0xff] }
  0xb9   :  { %v68_v14 = vpop.xlane.xlu1 %67  ;;  %v66_v15 = vpop.xlane.xlu0 %65  ;;  %v463_v37 = vpack.c.bf16 %v267_v36, %v266_v1 }
  0xba   :  { %v70_v17 = vmul.f32 0.0078125, %v68_v14  ;;  %v69_v18 = vmul.f32 0.0078125, %v66_v15 }
  0xbb   :  { %464 = vmatprep.subr.bf16.mxu1 %v463_v37  ;;  %v380_v37 = vld [vmem:[%s703_s6] ss:$0 sm:$0xff] }
  0xbc   :  { %v74_v19 = vsub.f32 %v70_v17, %v72_v13  ;;  %v73_v20 = vsub.f32 %v69_v18, %v71_v16  ;;  %466 = vmatpush3.bf16.msra.mxu1 %v465_v40 }
  0xbd   :  { %468 = vmatprep.subr.bf16.mxu1 %v467_v44 }
  0xbe   :  { %v76_v21 = vmax.f32 %v74_v19, 0.0  ;;  %v75_v22 = vmax.f32 %v73_v20, 0.0 }
  0xc0   :  { %v78_v23 = vadd.f32 1e-05, %v76_v21  ;;  %v77_v24 = vadd.f32 1e-05, %v75_v22  ;;  %470 = vmatpush3.bf16.msra.mxu1 %v469_v47 }
  0xc2   :  { %491 = vrsqrt.f32 %v78_v23 }
  0xc3   :  { %493 = vrsqrt.f32 %v77_v24 }
  0xcc   :  { %v492_v25 = vpop.eup %491 }
  0xcd   :  { %v494_v28 = vpop.eup %493  ;;  %v84_v31 = vmul.f32 %v492_v25, %v82_v26 }
  0xce   :  { %v83_v30 = vmul.f32 %v494_v28, %v81_v27 }
  0xcf   :  { %v93_v35 = vmul.f32 %v378_v29, %v84_v31 }
  0xd0   :  { %v92_v33 = vmul.f32 %v378_v29, %v83_v30 }
  0xd1   :  { %v102_v0 = vadd.f32 %v379_v32, %v93_v35 }
  0xd2   :  { %v101_v34 = vadd.f32 %v379_v32, %v92_v33 }
  0xd4   :  { %212 = vmatmul.mubr.f32.vlgmr.msra.gmra.mrb[0].mxu0 %v101_v34 }
  0xd5   :  { %217 = vmatprep.mubr.f32.mxu0 %v581_v41  ;;  %v271_v41 = vld [vmem:[#allocation5 + $0xd8] sm:$0xff] }
  0xd6   :  { %v471_v49 = vpack.c.bf16 %v271_v41, %v270_v48 }
  0xd8   :  { %218 = vmatmul.mubr.f32.gmra.mrb[2].mxu0 %v102_v0  ;;  %472 = vmatprep.subr.bf16.mxu1 %v471_v49 }
  0xd9   :  { %474 = vmatpush3.bf16.msra.mxu1 %v473_v52 }
  0xda   :  { %476 = vmatprep.subr.bf16.mxu1 %v475_v55 }
  0xdd   :  { %478 = vmatpush3.bf16.msra.mxu1 %v477_v58 }
  0xde   :  { %480 = vmatprep.subr.bf16.mxu1 %v479_v61 }
  0xe1   :  { %482 = vmatpush3.bf16.msra.mxu1 %v481_v2 }
 0x1a7   :  { %v213_v10 = vpop.f32.mrb[0].mxu0 }
 0x1a8   :  { %v214_v11 = vadd.f32 %v213_v10, %v140_v8  ;;  %v215_v12 = vpop.f32.mrb[1].mxu0 }
 0x1a9   :  { %v216_v13 = vadd.f32 %v215_v12, %v144_v9 }
 0x1aa   :  { %v228_v14 = vmul.f32 0.70710677, %v214_v11  ;;  %v224_v27 = vmul.f32 0.5, %v214_v11 }
 0x1ab   :  { %v229_v15 = vmul.f32 0.70710677, %v216_v13  ;;  %v219_v16 = vpop.f32.mrb[2].mxu0  ;;  %v225_v25 = vmul.f32 0.5, %v216_v13 }
 0x1ac   :  { %495 = verf.f32 %v228_v14  ;;  %v220_v17 = vadd.f32 %v219_v16, %v140_v8  ;;  %v221_v18 = vpop.f32.mrb[3].mxu0 }
 0x1ad   :  { %497 = verf.f32 %v229_v15  ;;  %v222_v19 = vadd.f32 %v221_v18, %v144_v9 }
 0x1ae   :  { %v230_v20 = vmul.f32 0.70710677, %v220_v17  ;;  %v226_v35 = vmul.f32 0.5, %v220_v17 }
 0x1af   :  { %v231_v21 = vmul.f32 0.70710677, %v222_v19  ;;  %v227_v33 = vmul.f32 0.5, %v222_v19 }
 0x1b0   :  { %499 = verf.f32 %v230_v20 }
 0x1b1   :  { %501 = verf.f32 %v231_v21 }
 0x1b6   :  { %v496_v22 = vpop.eup %495 }
 0x1b7   :  { %v498_v23 = vpop.eup %497  ;;  %v236_v24 = vadd.f32 1.0, %v496_v22 }
 0x1b8   :  { %v237_v26 = vadd.f32 1.0, %v498_v23 }
 0x1b9   :  { %v240_v32 = vmul.f32 %v236_v24, %v224_v27 }
 0x1ba   :  { %v500_v28 = vpop.eup %499  ;;  %v241_v29 = vmul.f32 %v237_v26, %v225_v25 }
 0x1bb   :  { %v502_v30 = vpop.eup %501  ;;  %v238_v31 = vadd.f32 1.0, %v500_v28 }
 0x1bc   :  { %v239_v34 = vadd.f32 1.0, %v502_v30  ;;  %347 = vmatprep.mubr.f32.mxu1 %v241_v29 }
 0x1bd   :  { %348 = vmatmul.mubr.f32.vlgmr.msra.gmra.mrb[0].mxu1 %v240_v32  ;;  %v242_v1 = vmul.f32 %v238_v31, %v226_v35 }
 0x1be   :  { %v243_v0 = vmul.f32 %v239_v34, %v227_v33 }
 0x1c0   :  { %352 = vmatprep.mubr.f32.mxu1 %v243_v0 }
 0x1c1   :  { %353 = vmatmul.mubr.f32.gmra.mrb[2].mxu1 %v242_v1 }
 0x290   :  { %v413_v36 = vpop.f32.mrb[0].mxu1 }
 0x291   :  { %v414_v38 = vpop.f32.mrb[1].mxu1 }
 0x292   :  { %v415_v39 = vadd.f32 %v414_v38, %v413_v36 }
 0x294   :  { %v350_v40 = vadd.f32 %v415_v39, %v380_v37  ;;  %v416_v42 = vpop.f32.mrb[2].mxu1 }
 0x295   :  { %v417_v43 = vpop.f32.mrb[3].mxu1 }
 0x296   :  { %358 = vst [vmem:[#allocation7] sm:$0xff] %v350_v40  ;;  %v418_v44 = vadd.f32 %v417_v43, %v416_v42 }
 0x298   :  { %v355_v45 = vadd.f32 %v418_v44, %v380_v37 }
 0x29a   :  { %359 = vst [vmem:[#allocation7 + $0x8] sm:$0xff] %v355_v45 }
 0x29b   :  { %558 = shalt.err (!%p555_p6)
}
 0x29c   :  { %s559_s16 = scalar_lea.hbm %s704_s7, 256 }
 0x29d   :  { %p560_p7 = scmp.ne.s32.totalorder %s704_s7, %s559_s16  ;;  %p563_p8 = scmp.lt.u32.totalorder %s559_s16, %s704_s7 }
 0x29f   :  { %p565_p9 = pnand %p563_p8, %p560_p7 }
 0x2a1   :  { %568 = shalt.err (!%p565_p9)
}
 0x2a2   :  { %371 = dma.vmem_to_hbm [thread:$0]  %s366_s13, 256, %s704_s7, [#allocation4], %s579_s3, %s579_s3, %s580_s25  }
 0x2a3   :  { %573 = dma.done.wait [#allocation4], 256  }
 0x2a4   :  { %574 = vsyncadd [#allocation4], 4294967040 }
 0x2a5   :  { %375 = vsyncpa [#allocation3], 1 }
 0x2a6   :  { %376 = vsyncpa [#allocation6], 1 }
 0x2a7   :  { %377 = vsyncpa [#allocation4], 1 }

</bundles_post_ra>
